<compile_context>
chip_gen: v5e
topology: v5e:2x2
jax: 0.10.0
libtpu: 0.0.40
codegen_flags: <defaults>
</compile_context>

<pallas_src>
import functools

import jax
import jax.numpy as jnp
from jax import lax
from jax.experimental import pallas as pl
from jax.experimental.pallas import tpu as pltpu


def _round_up(x: int, m: int) -> int:
    return ((x + m - 1) // m) * m


def _pick_tile(dim: int, unit: int, cap: int) -> int:
    """Largest multiple of `unit` that divides `dim` and is <= cap (>= unit)."""
    best = unit
    t = unit
    limit = min(dim, cap)
    while t <= limit:
        if dim % t == 0:
            best = t
        t += unit
    return best


# Tile caps: f32 worst case (512,1024,2048) is ~30 MiB of double-buffered VMEM,
# comfortably under the explicit limit below and v7x's 64 MiB physical VMEM.
_TM_CAP, _TN_CAP, _TK_CAP = 512, 1024, 2048


def _slimfc_kernel_f32(x_ref, w_ref, b_ref, o_ref, *, use_relu: bool):
    """f32-output path: accumulate directly into the resident output block.

    x_ref : (tm, tk)  activations
    w_ref : (tn, tk)  weight in PyTorch (out, in) layout; contracted on dim 1.
    b_ref : (1, tn)   bias slab for this N tile
    o_ref : (tm, tn)  f32 output tile (resident across the K grid axis)
    """
    k = pl.program_id(2)

    @pl.when(k == 0)
    def _():
        o_ref[...] = jnp.zeros_like(o_ref)

    # y += x @ W^T without materializing a transpose: contract dim 1 of both.
    o_ref[...] += lax.dot_general(
        x_ref[...], w_ref[...],
        dimension_numbers=(((1,), (1,)), ((), ())),
        preferred_element_type=jnp.float32)

    @pl.when(k == pl.num_programs(2) - 1)
    def _():
        y = o_ref[...] + b_ref[...]
        if use_relu:
            y = jnp.maximum(y, 0.0)
        o_ref[...] = y


def _slimfc_kernel_acc(x_ref, w_ref, b_ref, o_ref, acc_ref, *, use_relu: bool):
    """Generic path: f32 VMEM scratch accumulator, cast on the last K step."""
    k = pl.program_id(2)

    @pl.when(k == 0)
    def _():
        acc_ref[...] = jnp.zeros_like(acc_ref)

    acc_ref[...] += lax.dot_general(
        x_ref[...], w_ref[...],
        dimension_numbers=(((1,), (1,)), ((), ())),
        preferred_element_type=jnp.float32)

    @pl.when(k == pl.num_programs(2) - 1)
    def _():
        y = acc_ref[...] + b_ref[...]
        if use_relu:
            y = jnp.maximum(y, 0.0)
        o_ref[...] = y.astype(o_ref.dtype)


@functools.partial(
    jax.jit, static_argnames=("out_size", "activation", "compute_dtype"))
def _slim_fc_apply(x, wp, bp, *, out_size, activation, compute_dtype):
    """y = act(x @ W^T + b) with W, b already padded/cast (shape (N, K), (1, N))."""
    B, in_size = x.shape
    N, K = wp.shape                              # multiples of 128 by construction
    out_dtype = x.dtype

    cdt = jnp.dtype(compute_dtype) if compute_dtype is not None else jnp.dtype(x.dtype)
    sub = max(8, 32 // cdt.itemsize)             # packed sublane unit: 8/16/32

    M = _round_up(B, sub)
    tm = _pick_tile(M, sub, _TM_CAP)
    tn = _pick_tile(N, 128, _TN_CAP)
    tk = _pick_tile(K, 128, _TK_CAP)

    # v7x has 2 TensorCores: make sure the parallel (M, N) sub-grid has >= 2
    # iterations so both cores (and their per-core HBM bandwidth) are used.
    if (M // tm) * (N // tn) == 1 and N >= 256:
        tn = _pick_tile(N, 128, N // 2)

    grid = (M // tm, N // tn, K // tk)           # reduction (K) axis last

    # Only the (small) activation is padded/cast per call; the weight was
    # prepared once at parameter-load time.
    xp = jnp.pad(x, ((0, M - B), (0, K - in_size)))
    if compute_dtype is not None:
        xp = xp.astype(compute_dtype)

    use_relu = (activation == "relu")
    f32_out = jnp.dtype(out_dtype) == jnp.dtype(jnp.float32)
    if f32_out:
        kernel = functools.partial(_slimfc_kernel_f32, use_relu=use_relu)
        scratch_shapes = []
    else:
        kernel = functools.partial(_slimfc_kernel_acc, use_relu=use_relu)
        scratch_shapes = [pltpu.VMEM((tm, tn), jnp.float32)]

    out_item = jnp.dtype(out_dtype).itemsize
    # Double-buffered inputs + output (+ scratch) working set -> explicit limit
    # (v5e defaults to a 16 MiB scoped VMEM limit; raise it so big tiles fit).
    working_set = (2 * tm * tk * xp.dtype.itemsize
                   + 2 * tn * tk * wp.dtype.itemsize
                   + 2 * tn * 4
                   + 2 * tm * tn * out_item
                   + (0 if f32_out else tm * tn * 4))
    vmem_limit = int(min(56 * 1024 * 1024,
                         max(32 * 1024 * 1024, working_set + (4 << 20))))

    flops = 2 * M * N * K
    # Account for re-streaming: x is read once per N tile, W once per M tile.
    bytes_accessed = (M * K * xp.dtype.itemsize * (N // tn)
                      + N * K * wp.dtype.itemsize * (M // tm)
                      + N * 4 * (M // tm)
                      + M * N * out_item)

    out = pl.pallas_call(
        kernel,
        out_shape=jax.ShapeDtypeStruct((M, N), out_dtype),
        grid_spec=pltpu.PrefetchScalarGridSpec(
            num_scalar_prefetch=0,
            grid=grid,
            in_specs=[
                pl.BlockSpec((tm, tk), lambda i, j, k: (i, k)),   # x
                pl.BlockSpec((tn, tk), lambda i, j, k: (j, k)),   # weight (out, in)
                pl.BlockSpec((1, tn), lambda i, j, k: (0, j)),    # bias
            ],
            out_specs=pl.BlockSpec((tm, tn), lambda i, j, k: (i, j)),
            scratch_shapes=scratch_shapes,
        ),
        compiler_params=pltpu.CompilerParams(
            dimension_semantics=("parallel", "parallel", "arbitrary"),
            vmem_limit_bytes=vmem_limit,
        ),
        cost_estimate=pl.CostEstimate(
            flops=flops, transcendentals=0, bytes_accessed=int(bytes_accessed)),
    )(xp, wp, bp)

    return out[:B, :out_size]


class SlimFC:
    """JAX/Pallas equivalent of the PyTorch SlimFC module (Linear + optional ReLU).

    Weight padding / dtype casting happen ONCE here (parameter-load time),
    mirroring nn.Linear parameter construction, not in the per-call jitted path.
    """

    def __init__(self, weight, bias, activation=None, compute_dtype=None):
        if activation not in (None, "relu"):
            raise ValueError(f"unsupported activation: {activation!r}")
        out_size, in_size = weight.shape
        assert bias.shape == (out_size,), bias.shape
        self.in_size = int(in_size)
        self.out_size = int(out_size)
        self.activation = activation
        self.compute_dtype = compute_dtype

        N = _round_up(out_size, 128)      # lane-dense output
        K = _round_up(in_size, 128)
        wp = jnp.pad(weight, ((0, N - out_size), (0, K - in_size)))
        if compute_dtype is not None:
            # TODO(synk): on v7x, jnp.float8_e4m3fn here halves weight HBM bytes
            # again vs bf16 (no int8 MXU path on v7x).
            wp = wp.astype(compute_dtype)
        bp = jnp.pad(bias, (0, N - out_size)).astype(jnp.float32).reshape(1, N)
        self._wp = jax.device_put(wp)
        self._bp = jax.device_put(bp)

    def __call__(self, x):
        assert x.shape[-1] == self.in_size, (x.shape, self.in_size)
        return _slim_fc_apply(
            x, self._wp, self._bp,
            out_size=self.out_size,
            activation=self.activation,
            compute_dtype=self.compute_dtype)


def slim_fc(x, weight, bias, activation=None, compute_dtype=None):
    """One-shot functional form (re-prepares the weight every call; prefer SlimFC)."""
    return SlimFC(weight, bias, activation, compute_dtype)(x)


def _xavier_uniform(key, shape, dtype=jnp.float32):
    # deterministic stand-in for the `initializer(linear.weight)` callable
    fan_out, fan_in = shape
    limit = (6.0 / (fan_in + fan_out)) ** 0.5
    return jax.random.uniform(key, shape, dtype, minval=-limit, maxval=limit)


if __name__ == "__main__":
    key = jax.random.PRNGKey(0)
    k1, k2, k3, k4 = jax.random.split(key, 4)

    # --- Case 1: small toy shape (grid = (1, 1, 1)) ---
    B, in_size, out_size = 8, 32, 64
    x = jax.random.normal(k1, (B, in_size), dtype=jnp.float32)
    weight = _xavier_uniform(k2, (out_size, in_size))    # initializer(linear.weight)
    bias = jnp.zeros((out_size,), dtype=jnp.float32)     # nn.init.constant_(bias, 0.0)

    fc_relu = SlimFC(weight, bias, activation="relu")
    out = jax.block_until_ready(fc_relu(x))
    ref = jnp.maximum(
        jnp.dot(x, weight.T, precision=jax.lax.Precision.HIGHEST) + bias, 0.0)
    assert jnp.allclose(out, ref, atol=1e-5, rtol=1e-5), "mismatch (relu)"

    fc_lin = SlimFC(weight, bias, activation=None)
    out_na = jax.block_until_ready(fc_lin(x))
    ref_na = jnp.dot(x, weight.T, precision=jax.lax.Precision.HIGHEST) + bias
    assert jnp.allclose(out_na, ref_na, atol=1e-5, rtol=1e-5), "mismatch (no act)"

    # --- Case 2: shape not aligned to 256/512 caps; divisor-based tiles give
    #     ZERO padding (tk=1152; tn=128 after the >=2-parallel-iteration split) ---
    B2, in2, out2 = 16, 1152, 384
    x2 = jax.random.normal(k3, (B2, in2), dtype=jnp.float32)
    w2 = _xavier_uniform(k4, (out2, in2))
    b2 = jnp.zeros((out2,), dtype=jnp.float32)

    fc2 = SlimFC(w2, b2, activation="relu")
    out2_ = jax.block_until_ready(fc2(x2))
    ref2 = jnp.maximum(
        jnp.dot(x2, w2.T, precision=jax.lax.Precision.HIGHEST) + b2, 0.0)
    assert jnp.allclose(out2_, ref2, atol=2e-3, rtol=2e-3), "mismatch (tiled relu)"

    # --- Case 3: bf16 weight/activation compute path (weight-HBM-BW win) ---
    fc3 = SlimFC(w2, b2, activation="relu", compute_dtype=jnp.bfloat16)
    out3 = jax.block_until_ready(fc3(x2))
    assert jnp.allclose(out3, ref2, atol=1e-1, rtol=1e-1), "mismatch (bf16 path)"

    print("KERNEL_OK")
</pallas_src>

<mosaic_0001>
module attributes {stable_mosaic.version = 11 : i64} {
  func.func @_slimfc_kernel_f32(%arg0: i32, %arg1: i32, %arg2: i32, %arg3: memref<8x128xf32, #tpu.memory_space<vmem>>, %arg4: memref<128x128xf32, #tpu.memory_space<vmem>>, %arg5: memref<1x128xf32, #tpu.memory_space<vmem>>, %arg6: memref<8x128xf32, #tpu.memory_space<vmem>>) attributes {dimension_semantics = [#tpu.dimension_semantics<parallel>, #tpu.dimension_semantics<parallel>, #tpu.dimension_semantics<arbitrary>], iteration_bounds = array<i64: 1, 1, 1>, scalar_prefetch = 0 : i64, scratch_operands = 0 : i64, tpu.core_type = #tpu.core_type<tc>, window_params = [{transform_indices = @transform_0, window_bounds = array<i64: 8, 128>}, {transform_indices = @transform_1, window_bounds = array<i64: 128, 128>}, {transform_indices = @transform_2, window_bounds = array<i64: 1, 128>}, {transform_indices = @transform_3, window_bounds = array<i64: 8, 128>}]} {
    %c0_i32 = arith.constant 0 : i32
    %0 = arith.cmpi eq, %arg2, %c0_i32 : i32
    %1 = arith.extui %0 : i1 to i32
    %c0_i32_0 = arith.constant 0 : i32
    %2 = arith.cmpi ne, %1, %c0_i32_0 : i32
    scf.if %2 {
      %cst_10 = arith.constant 0.000000e+00 : f32
      %12 = vector.broadcast %cst_10 : f32 to vector<8x128xf32>
      %c0_11 = arith.constant 0 : index
      %c0_12 = arith.constant 0 : index
      %13 = vector.load %arg6[%c0_11, %c0_12] : memref<8x128xf32, #tpu.memory_space<vmem>>, vector<8x128xf32>
      tpu.vector_store %arg6[%c0_11, %c0_12], %12 {strides = array<i32>} : memref<8x128xf32, #tpu.memory_space<vmem>>, vector<8x128xf32>,
    } else {
    }
    %c0 = arith.constant 0 : index
    %c0_1 = arith.constant 0 : index
    %3 = vector.load %arg6[%c0, %c0_1] : memref<8x128xf32, #tpu.memory_space<vmem>>, vector<8x128xf32>
    %c0_2 = arith.constant 0 : index
    %c0_3 = arith.constant 0 : index
    %4 = vector.load %arg3[%c0_2, %c0_3] : memref<8x128xf32, #tpu.memory_space<vmem>>, vector<8x128xf32>
    %c0_4 = arith.constant 0 : index
    %c0_5 = arith.constant 0 : index
    %5 = vector.load %arg4[%c0_4, %c0_5] : memref<128x128xf32, #tpu.memory_space<vmem>>, vector<128x128xf32>
    %cst = arith.constant dense<0.000000e+00> : vector<8x128xf32>
    %6 = tpu.matmul %4, %5, %cst {dimension_numbers = #tpu.dot_dimension_numbers<[1], [1], [0], [0], [0, 0, 1, 0], [], []>} : vector<8x128xf32>, vector<128x128xf32>, vector<8x128xf32> -> vector<8x128xf32>
    %7 = arith.addf %3, %6 : vector<8x128xf32>
    %c0_6 = arith.constant 0 : index
    %c0_7 = arith.constant 0 : index
    %8 = vector.load %arg6[%c0_6, %c0_7] : memref<8x128xf32, #tpu.memory_space<vmem>>, vector<8x128xf32>
    tpu.vector_store %arg6[%c0_6, %c0_7], %7 {strides = array<i32>} : memref<8x128xf32, #tpu.memory_space<vmem>>, vector<8x128xf32>,
    %c0_i32_8 = arith.constant 0 : i32
    %9 = arith.cmpi eq, %arg2, %c0_i32_8 : i32
    %10 = arith.extui %9 : i1 to i32
    %c0_i32_9 = arith.constant 0 : i32
    %11 = arith.cmpi ne, %10, %c0_i32_9 : i32
    scf.if %11 {
      %c0_10 = arith.constant 0 : index
      %c0_11 = arith.constant 0 : index
      %12 = vector.load %arg6[%c0_10, %c0_11] : memref<8x128xf32, #tpu.memory_space<vmem>>, vector<8x128xf32>
      %c0_12 = arith.constant 0 : index
      %c0_13 = arith.constant 0 : index
      %13 = vector.load %arg5[%c0_12, %c0_13] : memref<1x128xf32, #tpu.memory_space<vmem>>, vector<1x128xf32>
      %14 = vector.broadcast %13 : vector<1x128xf32> to vector<8x128xf32>
      %15 = arith.addf %12, %14 : vector<8x128xf32>
      %cst_14 = arith.constant 0.000000e+00 : f32
      %16 = vector.broadcast %cst_14 : f32 to vector<8x128xf32>
      %17 = arith.maximumf %15, %16 : vector<8x128xf32>
      %c0_15 = arith.constant 0 : index
      %c0_16 = arith.constant 0 : index
      %18 = vector.load %arg6[%c0_15, %c0_16] : memref<8x128xf32, #tpu.memory_space<vmem>>, vector<8x128xf32>
      tpu.vector_store %arg6[%c0_15, %c0_16], %17 {strides = array<i32>} : memref<8x128xf32, #tpu.memory_space<vmem>>, vector<8x128xf32>,
    } else {
    }
    return
  }
  func.func @transform_0(%arg0: i32, %arg1: i32, %arg2: i32) -> (i32, i32) {
    %c0_i32 = arith.constant 0 : i32
    return %arg0, %arg2 : i32, i32
  }
  func.func @transform_1(%arg0: i32, %arg1: i32, %arg2: i32) -> (i32, i32) {
    %c0_i32 = arith.constant 0 : i32
    return %arg1, %arg2 : i32, i32
  }
  func.func @transform_2(%arg0: i32, %arg1: i32, %arg2: i32) -> (i32, i32) {
    %c0_i32 = arith.constant 0 : i32
    %c0_i32_0 = arith.constant 0 : i32
    return %c0_i32, %arg1 : i32, i32
  }
  func.func @transform_3(%arg0: i32, %arg1: i32, %arg2: i32) -> (i32, i32) {
    %c0_i32 = arith.constant 0 : i32
    return %arg0, %arg1 : i32, i32
  }
}

</mosaic_0001>

<bundles_post_ra>
// kernel: _slim_fc_apply.1
= control target key start
LH: loop header
LB: loop body
LE: loop exit
PB: predicated region body
PF: predicated region fallthrough
CT: control target
= control target key end

     0   :  { %8 = vsyncpa [#allocation3], 0  ;;  %s198_s0 = inlined_call_operand.vmem [shape: f32[8,128], index: 0, kind: input, shape index: {}]   ;;  %s199_s1 = inlined_call_operand.hbm [shape: f32[128,128], index: 1, kind: input, shape index: {}]   ;;  %s200_s2 = inlined_call_operand.vmem [shape: f32[1,128], index: 2, kind: input, shape index: {}]   ;;  %s201_s3 = inlined_call_operand.hbm [shape: f32[8,128], index: 3, kind: output, shape index: {}]  }
   0x1   :  { %9 = vsyncpa [#allocation4], 0  ;;  %s16_s14 = sshll.u32 %s199_s1, 4  ;;  %s162_s15 = smov [#allocation2]   ;;  %s17_s14 = int_to_ptr.hbm [resolvable:$true] %s16_s14 }
   0x2   :  { %s18_s16 = sshll.u32 %s162_s15, 4  ;;  %s163_s17 = smov 128   ;;  %s19_s16 = int_to_ptr.vmem [resolvable:$true] %s18_s16 }
   0x3   :  { %s164_s18 = smov 8  }
   0x4   :  { %24 = dma.hbm_to_vmem [thread:$0]  %s17_s14, 2048, %s19_s16, [#allocation3], %s163_s17, %s163_s17, %s164_s18  }
   0x5   :  { %158 = dma.done.wait [#allocation3], 2048  }
   0x6   :  { %159 = vsyncadd [#allocation3], 4294965248  ;;  %v53_v0 = vld [vmem:[#allocation2 + $0x78] sm:$0xff]  ;;  %v52_v1 = vld [vmem:[#allocation2 + $0x70] sm:$0xff]  ;;  %s165_s22 = smov [#allocation5]   ;;  %s94_s26 = sshll.u32 %s201_s3, 4  ;;  %s95_s26 = int_to_ptr.hbm [resolvable:$true] %s94_s26 }
   0x7   :  { %54 = vmatpush.xpose.msra.mxu0 %v53_v0  ;;  %v51_v2 = vld [vmem:[#allocation2 + $0x68] sm:$0xff]  ;;  %v50_v3 = vld [vmem:[#allocation2 + $0x60] sm:$0xff]  ;;  %v49_v4 = vld [vmem:[#allocation2 + $0x58] sm:$0xff]  ;;  %s92_s23 = sshll.u32 %s165_s22, 4  ;;  %s93_s23 = int_to_ptr.vmem [resolvable:$true] %s92_s23 }
   0x8   :  { %v48_v5 = vld [vmem:[#allocation2 + $0x50] sm:$0xff]  ;;  %v47_v6 = vld [vmem:[#allocation2 + $0x48] sm:$0xff]  ;;  %v46_v7 = vld [vmem:[#allocation2 + $0x40] sm:$0xff] }
   0x9   :  { %v45_v8 = vld [vmem:[#allocation2 + $0x38] sm:$0xff]  ;;  %v44_v9 = vld [vmem:[#allocation2 + $0x30] sm:$0xff]  ;;  %v43_v10 = vld [vmem:[#allocation2 + $0x28] sm:$0xff] }
   0xa   :  { %v42_v11 = vld [vmem:[#allocation2 + $0x20] sm:$0xff]  ;;  %v41_v12 = vld [vmem:[#allocation2 + $0x18] sm:$0xff]  ;;  %v40_v13 = vld [vmem:[#allocation2 + $0x10] sm:$0xff] }
   0xb   :  { %55 = vmatpush.xpose.msra.mxu0 %v52_v1  ;;  %v39_v14 = vld [vmem:[#allocation2 + $0x8] sm:$0xff]  ;;  %v38_v15 = vld [vmem:[#allocation2] sm:$0xff] }
   0xc   :  { %v37_v16 = vld [vmem:[%s198_s0] sm:$0xff] }
   0xd   :  { %v109_v17 = vld [vmem:[%s200_s2] ss:$0 sm:$0xff] }
   0xf   :  { %56 = vmatpush.xpose.msra.mxu0 %v51_v2 }
  0x13   :  { %57 = vmatpush.xpose.msra.mxu0 %v50_v3 }
  0x17   :  { %58 = vmatpush.xpose.msra.mxu0 %v49_v4 }
  0x1b   :  { %59 = vmatpush.xpose.msra.mxu0 %v48_v5 }
  0x1f   :  { %60 = vmatpush.xpose.msra.mxu0 %v47_v6 }
  0x23   :  { %61 = vmatpush.xpose.msra.mxu0 %v46_v7 }
  0x27   :  { %62 = vmatpush.xpose.msra.mxu0 %v45_v8 }
  0x2b   :  { %63 = vmatpush.xpose.msra.mxu0 %v44_v9 }
  0x2f   :  { %64 = vmatpush.xpose.msra.mxu0 %v43_v10 }
  0x33   :  { %65 = vmatpush.xpose.msra.mxu0 %v42_v11 }
  0x37   :  { %66 = vmatpush.xpose.msra.mxu0 %v41_v12 }
  0x3b   :  { %67 = vmatpush.xpose.msra.mxu0 %v40_v13 }
  0x3f   :  { %68 = vmatpush.xpose.msra.mxu0 %v39_v14 }
  0x43   :  { %69 = vmatpush.xpose.msra.mxu0 %v38_v15 }
  0x46   :  { %70 = vmatmul.f32.vlgmr.msra.gmra.mxu0 %v37_v16 }
  0xc3   :  { %v71_v18 = vpop.f32.mrf.mxu0 }
  0xc4   :  { %v84_v19 = vadd.f32 %v109_v17, %v71_v18 }
  0xc6   :  { %v85_v20 = vmax.f32 %v84_v19, 0.0 }
  0xc8   :  { %86 = vst [vmem:[#allocation5] sm:$0xff] %v85_v20 }
  0xc9   :  { %97 = dma.vmem_to_hbm [thread:$0]  %s93_s23, 128, %s95_s26, [#allocation4]  }
  0xca   :  { %160 = dma.done.wait [#allocation4], 128  }
  0xcb   :  { %161 = vsyncadd [#allocation4], 4294967168 }
  0xcc   :  { %102 = vsyncpa [#allocation3], 1 }
  0xcd   :  { %103 = vsyncpa [#allocation4], 1 }

</bundles_post_ra>
